<compile_context>
chip_gen: v6e
topology: v6e:2x2x1
jax: 0.10.0
libtpu: 0.0.40
codegen_flags: <defaults>
</compile_context>

<pallas_src>
import functools

import jax
import jax.numpy as jnp
from jax.experimental import pallas as pl
from jax.experimental.pallas import tpu as pltpu

LEAKY_SLOPE = 0.01
CLINICAL_NEURONS = 11
DEFAULT_BATCH_TILE = 8192   # rows per grid step (multiple of 128)


def _leaky_relu(x, slope):
    return jnp.where(x >= 0, x, slope * x)


def _round_up(x, m):
    return ((x + m - 1) // m) * m


def hnann_kernel(tab_ref, w1_ref, b1_ref, w2_ref, b2_ref, w3_ref, b3_ref,
                 out_ref):
    """One batch tile of the MLP, batch on the lane axis.

    tab_ref : (11, TB)   w1: (8, 11) b1: (8, 1)
                         w2: (4, 8)  b2: (4, 1)
                         w3: (1, 4)  b3: (1, 1)
    out_ref : (1, TB)
    """
    x = tab_ref[...].astype(jnp.float32)                            # (11, TB)

    # ln1 + LeakyReLU (+ dropout == identity at inference)
    h1 = jnp.dot(w1_ref[...], x, preferred_element_type=jnp.float32)
    h1 = _leaky_relu(h1 + b1_ref[...], LEAKY_SLOPE)                 # (8, TB)

    # ln2 + LeakyReLU (+ dropout == identity at inference)
    h2 = jnp.dot(w2_ref[...], h1, preferred_element_type=jnp.float32)
    h2 = _leaky_relu(h2 + b2_ref[...], LEAKY_SLOPE)                 # (4, TB)

    # ln3 + Sigmoid:  sigmoid(z) = 1 / (1 + exp(-z))  (exp + recip -> EUP)
    h3 = jnp.dot(w3_ref[...], h2, preferred_element_type=jnp.float32)
    h3 = h3 + b3_ref[...]                                           # (1, TB)
    e = jnp.exp(-h3)
    out_ref[...] = pl.reciprocal(1.0 + e, approx=False).astype(out_ref.dtype)


@functools.partial(jax.jit, static_argnames=("batch_tile",))
def hnann_forward(img, tab, params, *, batch_tile=DEFAULT_BATCH_TILE):
    """Pallas wrapper. `img` is accepted (matching the PyTorch signature) but
    unused, exactly as in HNANN.forward."""
    del img  # unused by the reference module's forward
    w1, b1, w2, b2, w3, b3 = params   # w: (out, in), b: (out,)  [torch layout]

    B, F = tab.shape
    assert F == CLINICAL_NEURONS, F

    # Choose a lane-aligned batch tile and pad B up to a multiple of it.
    tb = min(batch_tile, _round_up(B, 128))
    tb = _round_up(tb, 128)
    b_pad = _round_up(B, tb)
    grid = (b_pad // tb,)

    # Batch-on-lane layout: (B, 11) -> (11, B_pad), zero-padded tail rows.
    tab_t = jnp.pad(tab.T, ((0, 0), (0, b_pad - B)))

    # Biases as (out, 1) columns so they broadcast over the lane (batch) axis.
    b1c = b1.reshape(-1, 1).astype(jnp.float32)
    b2c = b2.reshape(-1, 1).astype(jnp.float32)
    b3c = b3.reshape(-1, 1).astype(jnp.float32)
    w1f = w1.astype(jnp.float32)
    w2f = w2.astype(jnp.float32)
    w3f = w3.astype(jnp.float32)

    const_spec = lambda shp: pl.BlockSpec(shp, lambda i: (0, 0))

    flops = b_pad * 2 * (11 * 8 + 8 * 4 + 4 * 1) + b_pad * 16
    bytes_accessed = (b_pad * (F * tab.dtype.itemsize + 4)
                      + 4 * (11 * 8 + 8 * 4 + 4 + 8 + 4 + 1))

    out_t = pl.pallas_call(
        hnann_kernel,
        out_shape=jax.ShapeDtypeStruct((1, b_pad), jnp.float32),
        grid=grid,
        in_specs=[
            pl.BlockSpec((CLINICAL_NEURONS, tb), lambda i: (0, i)),
            const_spec(w1f.shape), const_spec(b1c.shape),
            const_spec(w2f.shape), const_spec(b2c.shape),
            const_spec(w3f.shape), const_spec(b3c.shape),
        ],
        out_specs=pl.BlockSpec((1, tb), lambda i: (0, i)),
        compiler_params=pltpu.CompilerParams(
            dimension_semantics=("parallel",),
            vmem_limit_bytes=32 * 1024 * 1024,
        ),
        cost_estimate=pl.CostEstimate(
            flops=int(flops),
            transcendentals=int(b_pad),
            bytes_accessed=int(bytes_accessed),
        ),
    )(tab_t, w1f, b1c, w2f, b2c, w3f, b3c)

    # Back to (B, 1), dropping batch padding.
    return out_t[:, :B].T


def init_params(key):
    """Deterministic init mimicking torch.nn.Linear default:
    U(-1/sqrt(fan_in), 1/sqrt(fan_in)). Weights stored torch-style as
    (out_features, in_features), biases as (out_features,)."""
    dims = [(CLINICAL_NEURONS, 8), (8, 4), (4, 1)]
    params = []
    for (fan_in, fan_out) in dims:
        key, kw, kb = jax.random.split(key, 3)
        bound = 1.0 / jnp.sqrt(float(fan_in))
        w = jax.random.uniform(kw, (fan_out, fan_in), jnp.float32,
                               minval=-bound, maxval=bound)
        b = jax.random.uniform(kb, (fan_out,), jnp.float32,
                               minval=-bound, maxval=bound)
        params.extend([w, b])
    return tuple(params)


def hnann_reference(tab, params):
    """Pure-JAX reference for correctness checking (same math as the kernel)."""
    w1, b1, w2, b2, w3, b3 = params
    h = _leaky_relu(tab @ w1.T + b1, LEAKY_SLOPE)
    h = _leaky_relu(h @ w2.T + b2, LEAKY_SLOPE)
    z = h @ w3.T + b3
    return 1.0 / (1.0 + jnp.exp(-z))


if __name__ == "__main__":
    key = jax.random.PRNGKey(0)
    key, k_img, k_tab = jax.random.split(key, 3)

    B = 8
    # img is part of the forward() signature but unused; keep a small NCHW tensor.
    img = jax.random.normal(k_img, (B, 1, 16, 16), jnp.float32)
    tab = jax.random.normal(k_tab, (B, CLINICAL_NEURONS), jnp.float32)

    params = init_params(jax.random.PRNGKey(42))

    out = hnann_forward(img, tab, params)
    out = jax.block_until_ready(out)

    ref = hnann_reference(tab, params)
    assert out.shape == (B, 1), out.shape
    assert jnp.allclose(out, ref, atol=1e-5, rtol=1e-5), (
        f"mismatch: {out} vs {ref}")

    print("KERNEL_OK")
</pallas_src>

<mosaic_0001>
module attributes {stable_mosaic.version = 11 : i64} {
  func.func @hnann_kernel(%arg0: i32, %arg1: memref<11x128xf32, #tpu.memory_space<vmem>>, %arg2: memref<8x11xf32, #tpu.memory_space<vmem>>, %arg3: memref<8x1xf32, #tpu.memory_space<vmem>>, %arg4: memref<4x8xf32, #tpu.memory_space<vmem>>, %arg5: memref<4x1xf32, #tpu.memory_space<vmem>>, %arg6: memref<1x4xf32, #tpu.memory_space<vmem>>, %arg7: memref<1x1xf32, #tpu.memory_space<vmem>>, %arg8: memref<1x128xf32, #tpu.memory_space<vmem>>) attributes {dimension_semantics = [#tpu.dimension_semantics<parallel>], iteration_bounds = array<i64: 1>, scalar_prefetch = 0 : i64, scratch_operands = 0 : i64, tpu.core_type = #tpu.core_type<tc>, window_params = [{transform_indices = @transform_0, window_bounds = array<i64: 11, 128>}, {pipeline_mode = #tpu.pipeline_mode<synchronous>, transform_indices = @transform_1, window_bounds = array<i64: 8, 11>}, {pipeline_mode = #tpu.pipeline_mode<synchronous>, transform_indices = @transform_2, window_bounds = array<i64: 8, 1>}, {pipeline_mode = #tpu.pipeline_mode<synchronous>, transform_indices = @transform_3, window_bounds = array<i64: 4, 8>}, {pipeline_mode = #tpu.pipeline_mode<synchronous>, transform_indices = @transform_4, window_bounds = array<i64: 4, 1>}, {pipeline_mode = #tpu.pipeline_mode<synchronous>, transform_indices = @transform_5, window_bounds = array<i64: 1, 4>}, {pipeline_mode = #tpu.pipeline_mode<synchronous>, transform_indices = @transform_6, window_bounds = array<i64: 1, 1>}, {transform_indices = @transform_7, window_bounds = array<i64: 1, 128>}]} {
    %c0 = arith.constant 0 : index
    %c0_0 = arith.constant 0 : index
    %0 = vector.load %arg1[%c0, %c0_0] : memref<11x128xf32, #tpu.memory_space<vmem>>, vector<11x128xf32>
    %c0_1 = arith.constant 0 : index
    %c0_2 = arith.constant 0 : index
    %1 = vector.load %arg2[%c0_1, %c0_2] : memref<8x11xf32, #tpu.memory_space<vmem>>, vector<8x11xf32>
    %cst = arith.constant dense<0.000000e+00> : vector<8x128xf32>
    %2 = tpu.matmul %1, %0, %cst {dimension_numbers = #tpu.dot_dimension_numbers<[1], [0], [0], [1], [0, 0, 1, 1], [], []>} : vector<8x11xf32>, vector<11x128xf32>, vector<8x128xf32> -> vector<8x128xf32>
    %c0_3 = arith.constant 0 : index
    %c0_4 = arith.constant 0 : index
    %3 = vector.load %arg3[%c0_3, %c0_4] : memref<8x1xf32, #tpu.memory_space<vmem>>, vector<8x1xf32>
    %4 = vector.broadcast %3 : vector<8x1xf32> to vector<8x128xf32>
    %5 = arith.addf %2, %4 : vector<8x128xf32>
    %cst_5 = arith.constant 0.000000e+00 : f32
    %6 = vector.broadcast %cst_5 : f32 to vector<8x128xf32>
    %7 = arith.cmpf oge, %5, %6 : vector<8x128xf32>
    %cst_6 = arith.constant 0.00999999977 : f32
    %8 = vector.broadcast %cst_6 : f32 to vector<8x128xf32>
    %9 = arith.mulf %8, %5 : vector<8x128xf32>
    %10 = arith.select %7, %5, %9 : vector<8x128xi1>, vector<8x128xf32>
    %c0_7 = arith.constant 0 : index
    %c0_8 = arith.constant 0 : index
    %11 = vector.load %arg4[%c0_7, %c0_8] : memref<4x8xf32, #tpu.memory_space<vmem>>, vector<4x8xf32>
    %cst_9 = arith.constant dense<0.000000e+00> : vector<4x128xf32>
    %12 = tpu.matmul %11, %10, %cst_9 {dimension_numbers = #tpu.dot_dimension_numbers<[1], [0], [0], [1], [0, 0, 1, 1], [], []>} : vector<4x8xf32>, vector<8x128xf32>, vector<4x128xf32> -> vector<4x128xf32>
    %c0_10 = arith.constant 0 : index
    %c0_11 = arith.constant 0 : index
    %13 = vector.load %arg5[%c0_10, %c0_11] : memref<4x1xf32, #tpu.memory_space<vmem>>, vector<4x1xf32>
    %14 = vector.broadcast %13 : vector<4x1xf32> to vector<4x128xf32>
    %15 = arith.addf %12, %14 : vector<4x128xf32>
    %cst_12 = arith.constant 0.000000e+00 : f32
    %16 = vector.broadcast %cst_12 : f32 to vector<4x128xf32>
    %17 = arith.cmpf oge, %15, %16 : vector<4x128xf32>
    %cst_13 = arith.constant 0.00999999977 : f32
    %18 = vector.broadcast %cst_13 : f32 to vector<4x128xf32>
    %19 = arith.mulf %18, %15 : vector<4x128xf32>
    %20 = arith.select %17, %15, %19 : vector<4x128xi1>, vector<4x128xf32>
    %c0_14 = arith.constant 0 : index
    %c0_15 = arith.constant 0 : index
    %21 = vector.load %arg6[%c0_14, %c0_15] : memref<1x4xf32, #tpu.memory_space<vmem>>, vector<1x4xf32>
    %cst_16 = arith.constant dense<0.000000e+00> : vector<1x128xf32>
    %22 = tpu.matmul %21, %20, %cst_16 {dimension_numbers = #tpu.dot_dimension_numbers<[1], [0], [0], [1], [0, 0, 1, 1], [], []>} : vector<1x4xf32>, vector<4x128xf32>, vector<1x128xf32> -> vector<1x128xf32>
    %c0_17 = arith.constant 0 : index
    %c0_18 = arith.constant 0 : index
    %23 = vector.load %arg7[%c0_17, %c0_18] : memref<1x1xf32, #tpu.memory_space<vmem>>, vector<1x1xf32>
    %24 = vector.broadcast %23 : vector<1x1xf32> to vector<1x128xf32>
    %25 = arith.addf %22, %24 : vector<1x128xf32>
    %cst_19 = arith.constant 0.000000e+00 : f32
    %26 = vector.broadcast %cst_19 : f32 to vector<1x128xf32>
    %27 = arith.subf %26, %25 : vector<1x128xf32>
    %28 = math.exp %27 : vector<1x128xf32>
    %cst_20 = arith.constant 1.000000e+00 : f32
    %29 = vector.broadcast %cst_20 : f32 to vector<1x128xf32>
    %30 = arith.addf %29, %28 : vector<1x128xf32>
    %31 = tpu.reciprocal %30 : vector<1x128xf32> -> vector<1x128xf32>
    %c0_21 = arith.constant 0 : index
    %c0_22 = arith.constant 0 : index
    %32 = vector.load %arg8[%c0_21, %c0_22] : memref<1x128xf32, #tpu.memory_space<vmem>>, vector<1x128xf32>
    tpu.vector_store %arg8[%c0_21, %c0_22], %31 {strides = array<i32>} : memref<1x128xf32, #tpu.memory_space<vmem>>, vector<1x128xf32>,
    return
  }
  func.func @transform_0(%arg0: i32) -> (i32, i32) {
    %c0_i32 = arith.constant 0 : i32
    %c0_i32_0 = arith.constant 0 : i32
    return %c0_i32, %arg0 : i32, i32
  }
  func.func @transform_1(%arg0: i32) -> (i32, i32) {
    %c0_i32 = arith.constant 0 : i32
    %c0_i32_0 = arith.constant 0 : i32
    %c0_i32_1 = arith.constant 0 : i32
    return %c0_i32, %c0_i32_0 : i32, i32
  }
  func.func @transform_2(%arg0: i32) -> (i32, i32) {
    %c0_i32 = arith.constant 0 : i32
    %c0_i32_0 = arith.constant 0 : i32
    %c0_i32_1 = arith.constant 0 : i32
    return %c0_i32, %c0_i32_0 : i32, i32
  }
  func.func @transform_3(%arg0: i32) -> (i32, i32) {
    %c0_i32 = arith.constant 0 : i32
    %c0_i32_0 = arith.constant 0 : i32
    %c0_i32_1 = arith.constant 0 : i32
    return %c0_i32, %c0_i32_0 : i32, i32
  }
  func.func @transform_4(%arg0: i32) -> (i32, i32) {
    %c0_i32 = arith.constant 0 : i32
    %c0_i32_0 = arith.constant 0 : i32
    %c0_i32_1 = arith.constant 0 : i32
    return %c0_i32, %c0_i32_0 : i32, i32
  }
  func.func @transform_5(%arg0: i32) -> (i32, i32) {
    %c0_i32 = arith.constant 0 : i32
    %c0_i32_0 = arith.constant 0 : i32
    %c0_i32_1 = arith.constant 0 : i32
    return %c0_i32, %c0_i32_0 : i32, i32
  }
  func.func @transform_6(%arg0: i32) -> (i32, i32) {
    %c0_i32 = arith.constant 0 : i32
    %c0_i32_0 = arith.constant 0 : i32
    %c0_i32_1 = arith.constant 0 : i32
    return %c0_i32, %c0_i32_0 : i32, i32
  }
  func.func @transform_7(%arg0: i32) -> (i32, i32) {
    %c0_i32 = arith.constant 0 : i32
    %c0_i32_0 = arith.constant 0 : i32
    return %c0_i32, %arg0 : i32, i32
  }
}

</mosaic_0001>

<bundles_post_ra>
// kernel: hnann_forward.1
= control target key start
LH: loop header
LB: loop body
LE: loop exit
PB: predicated region body
PF: predicated region fallthrough
CT: control target
= control target key end

     0   :  { %vm41_vm0 = vcmask 1042432   ;;  %v339_v0 = vmov 0.0   ;;  %vm340_vm1 = vmmov 0   ;;  %vm37_vm2 = vcmask 89088   ;;  %s412_s0 = inlined_call_operand.vmem [shape: f32[11,128], index: 0, kind: input, shape index: {}]   ;;  %s413_s1 = inlined_call_operand.vmem [shape: f32[8,11], index: 1, kind: input, shape index: {}]   ;;  %s414_s2 = inlined_call_operand.vmem [shape: f32[8,1], index: 2, kind: input, shape index: {}]   ;;  %s415_s4 = inlined_call_operand.vmem [shape: f32[4,1], index: 4, kind: input, shape index: {}]   ;;  %s416_s3 = inlined_call_operand.vmem [shape: f32[4,8], index: 3, kind: input, shape index: {}]   ;;  %s417_s6 = inlined_call_operand.<no memory space> [shape: f32[1,1], index: 6, kind: input, shape index: {}]   ;;  %s418_s5 = inlined_call_operand.vmem [shape: f32[1,4], index: 5, kind: input, shape index: {}]   ;;  %s419_s7 = inlined_call_operand.vmem [shape: f32[1,128], index: 7, kind: output, shape index: {}]  }
   0x1   :  { %313 = vmatprep.subr.mxu0 %v339_v0  ;;  %v29_v1 = vld [vmem:[%s412_s0 + $0x8] sm:$0x7]  ;;  %v28_v2 = vld [vmem:[%s412_s0] sm:$0xff]  ;;  %317 = vmatprep.mubr.msk.f32.mxu0 %vm340_vm1, %v339_v0  ;;  %v341_v4 = vmov 0   ;;  %vm125_vm4 = vcmask 64512   ;;  %v12_v14 = vstv %s417_s6  ;;  %vm217_vm6 = vcmask 1043456  }
   0x2   :  { %314 = vmatpush3.msk.msra.mxu0 %vm41_vm0, %v29_v1  ;;  %v30_v3 = vld [vmem:[%s413_s1] sm:$0xff]  ;;  %333 = vset.pattern.permute.xlu0 %v341_v4  ;;  %13 = vst [vmem:[#allocation2] sm:$0x1] %v12_v14  ;;  %vm213_vm7 = vcmask 31744   ;;  %v209_v23 = vlaneseq }
   0x3   :  { %v31_v5 = vld [vmem:[%s414_s2] sm:$0xff]  ;;  %315 = vmatprep.subr.mxu0 %v339_v0  ;;  %320 = vmatprep.subr.mxu1 %v339_v0 }
   0x4   :  { %34 = vperm.xlu0 %333, %v31_v5   ;;  %316 = vmatpush3.msra.mxu0 %v28_v2  ;;  %v119_v6 = vld [vmem:[%s415_s4] sm:$0xf]  ;;  %v210_v24 = vshrl.u32 %v209_v23, 7 }
   0x5   :  { %318 = vmatmul.mubr.msk.f32.vlgmr.msra.gmra.mxu0 %vm37_vm2, %v30_v3  ;;  %322 = vmatprep.mubr.msk.f32.mxu1 %vm340_vm1, %v339_v0  ;;  %v118_v12 = vld [vmem:[%s416_s3] sm:$0xf] }
   0x6   :  { %334 = vset.pattern.permute.xlu1 %v341_v4  ;;  %v202_v21 = vld [vmem:[%s418_s5] sm:$0x1]  ;;  %v211_v25 = vsub.s32 0, %v210_v24 }
   0x8   :  { %122 = vperm.xlu0 %333, %v119_v6  }
   0x9   :  { %v203_v15 = vld [vmem:[#allocation2] sm:$0x1] }
   0xa   :  { %206 = vperm.xlu1 %334, %v203_v15  }
  0x7f   :  { %v35_v7 = vpop.permute.xlu0 %34 }
  0x83   :  { %v123_v16 = vpop.permute.xlu0 %122 }
  0x85   :  { %v207_v26 = vpop.permute.xlu1 %206 }
  0x86   :  { %v212_v27 = vrot.slane %v207_v26, %v211_v25 }
  0xc5   :  { %v111_v8 = vpop.f32.mrf.mxu0 }
  0xc6   :  { %v112_v9 = vadd.f32 %v111_v8, %v35_v7 }
  0xc7   :  { %v319_v10 = vpop.f32.mrf.mxu0 }
  0xc8   :  { %vm115_vm3 = vcmp.ge.f32.partialorder %v112_v9, 0.0  ;;  %v116_v11 = vmul.f32 0.01, %v112_v9 }
  0xca   :  { %v117_v13 = vsel %vm115_vm3, %v112_v9, %v116_v11 }
  0xcb   :  { %321 = vmatpush3.msra.mxu1 %v117_v13 }
  0xcc   :  { %323 = vmatmul.mubr.msk.f32.vlgmr.msra.gmra.mxu1 %vm125_vm4, %v118_v12  ;;  %325 = vmatprep.subr.mxu1 %v339_v0 }
  0xcd   :  { %327 = vmatprep.mubr.msk.f32.mxu1 %vm340_vm1, %v339_v0 }
 0x18c   :  { %v195_v17 = vpop.f32.mrf.mxu1 }
 0x18d   :  { %v196_v18 = vadd.f32 %v195_v17, %v123_v16 }
 0x18e   :  { %v324_v19 = vpop.f32.mrf.mxu1 }
 0x18f   :  { %vm199_vm5 = vcmp.ge.f32.partialorder %v196_v18, 0.0  ;;  %v200_v20 = vmul.f32 0.01, %v196_v18 }
 0x191   :  { %v201_v22 = vsel %vm199_vm5, %v196_v18, %v200_v20 }
 0x192   :  { %326 = vmatpush3.msk.msra.mxu1 %vm217_vm6, %v201_v22 }
 0x193   :  { %328 = vmatmul.mubr.msk.f32.vlgmr.msra.gmra.mxu1 %vm213_vm7, %v202_v21 }
 0x253   :  { %v287_v28 = vpop.f32.mrf.mxu1 }
 0x254   :  { %v288_v29 = vadd.f32 %v287_v28, %v212_v27 }
 0x255   :  { %v329_v30 = vpop.f32.mrf.mxu1 }
 0x256   :  { %v291_v31 = vsub.f32 0.0, %v288_v29 }
 0x258   :  { %v292_v32 = vmul.f32 1.442695, %v291_v31 }
 0x25a   :  { %335 = vpow2.f32 %v292_v32 }
 0x267   :  { %v336_v33 = vpop.eup %335 }
 0x268   :  { %v294_v34 = vadd.f32 1.0, %v336_v33 }
 0x26a   :  { %337 = vrcp.f32 %v294_v34 }
 0x277   :  { %v338_v35 = vpop.eup %337 }
 0x278   :  { %296 = vst [vmem:[%s419_s7] sm:$0x1] %v338_v35 }

</bundles_post_ra>
